<compile_context>
chip_gen: v5e
topology: v5e:2x2
jax: 0.10.0
libtpu: 0.0.40
codegen_flags: <defaults>
</compile_context>

<pallas_src>
import functools

import jax
import jax.numpy as jnp
from jax import lax
from jax.experimental import pallas as pl
from jax.experimental.pallas import tpu as pltpu


def _round_up(a, m):
    return ((a + m - 1) // m) * m


def _cdiv(a, b):
    return (a + b - 1) // b


def _conv_down_ln_kernel(xp_ref, xh_ref, w_ref, g_ref, b_ref, o_ref, lhs_ref,
                         *, eps, inv_n, tile_l, dim_p):
    # xp_ref : (tile_l, 2*dim_p) bf16  rows j = [x_p[2j] ‖ x_p[2j+1]]
    # xh_ref : (8, 2*dim_p)     bf16  halo; row 0 cols [:dim_p] = x_p[2*(tile_end)]
    # w_ref  : (3*dim_p, 2*dim_p) bf16 fused per-tap weights
    # g_ref/b_ref : (1, 2*dim_p) f32   o_ref : (tile_l, 2*dim_p)
    # lhs_ref: (tile_l, 3*dim_p) bf16 scratch (single K=3*dim MXU contraction)
    d = dim_p

    # Taps 0 & 1 are already channel-fused per row: straight aligned copy.
    lhs_ref[:, 0:2 * d] = xp_ref[...]
    # Tap 2 (x_p[2j+2]): rows 0..T-2 = next row's first half; last row from halo.
    lhs_ref[pl.ds(0, tile_l - 1), 2 * d:] = xp_ref[pl.ds(1, tile_l - 1), 0:d]
    lhs_ref[pl.ds(tile_l - 1, 1), 2 * d:] = xh_ref[pl.ds(0, 1), 0:d]

    # Conv as one MXU matmul, f32 accumulation.
    y = jnp.dot(lhs_ref[...], w_ref[...], preferred_element_type=jnp.float32)

    # One-pass LayerNorm statistics in f32 (padded channels contribute exact 0).
    s1 = jnp.sum(y, axis=-1, keepdims=True)
    s2 = jnp.sum(y * y, axis=-1, keepdims=True)
    mean = s1 * inv_n
    var = jnp.maximum(s2 * inv_n - mean * mean, 0.0)   # clamp: no rsqrt(<0)
    rstd = lax.rsqrt(var + eps)

    # Affine folded into scale/shift (padded columns: gamma=beta=0 -> output 0).
    scale = g_ref[...] * rstd
    shift = b_ref[...] - mean * scale
    o_ref[...] = (y * scale + shift).astype(o_ref.dtype)


def conv_downsampler(x, conv_weight, gamma, beta, *, eps=1e-5, max_tile_l=1024,
                     out_dtype=None):
    """x: (B, L, dim); conv_weight: (2*dim, dim, 3) (PyTorch OIH); gamma/beta: (2*dim,)."""
    B, L, dim = x.shape
    out_dim = 2 * dim
    L_out = (L - 1) // 2 + 1                   # k=3, s=2, p=1
    if out_dtype is None:
        out_dtype = x.dtype

    # Lane-align channel axes (zero-padded; padded outputs sliced off below).
    dim_p = _round_up(dim, 128)
    out_dim_p = 2 * dim_p

    # Balanced L_out tiling: multiple of 8 sublanes, minimal padding waste.
    n_l_tiles = max(1, _cdiv(L_out, max_tile_l))
    tile_l = _round_up(_cdiv(L_out, n_l_tiles), 8)
    n_l_tiles = _cdiv(L_out, tile_l)
    # v7x megacore: keep >= 2 grid steps so both TensorCores get work.
    if B == 1 and n_l_tiles == 1 and L_out > 8:
        tile_l = _round_up(_cdiv(L_out, 2), 8)
        n_l_tiles = _cdiv(L_out, tile_l)
    L_out_pad = n_l_tiles * tile_l
    L_pair = L_out_pad + 8                      # + halo rows for the last tap
    L_tot = 2 * L_pair

    # Pad (1 front row = conv padding, zero tail, zero channels) and fold even/odd
    # rows into channels with a free row-major reshape: no HBM gather round-trip.
    x_b = x.astype(jnp.bfloat16)
    x_pad = jnp.pad(x_b, ((0, 0), (1, L_tot - 1 - L), (0, dim_p - dim)))
    x_pair = x_pad.reshape(B, L_pair, 2 * dim_p)

    # Fused per-tap weights (3*dim_p, 2*dim_p): row block k multiplies tap k.
    w_taps = []
    for k in range(3):
        wk = conv_weight[:, :, k].T                                   # (dim, out_dim)
        w_taps.append(jnp.pad(wk, ((0, dim_p - dim), (0, out_dim_p - out_dim))))
    w_cat = jnp.concatenate(w_taps, axis=0).astype(jnp.bfloat16)
    g2d = jnp.pad(gamma, (0, out_dim_p - out_dim)).reshape(1, out_dim_p).astype(jnp.float32)
    b2d = jnp.pad(beta, (0, out_dim_p - out_dim)).reshape(1, out_dim_p).astype(jnp.float32)

    # VMEM budget: double-buffered blocks + resident weights + scratch + f32 temps,
    # plus slack; capped at 48 MiB (headroom under v7x's 64 MiB per-TC VMEM).
    in_blk = tile_l * 2 * dim_p * 2
    halo_blk = 8 * 2 * dim_p * 2
    w_bytes = 3 * dim_p * out_dim_p * 2
    out_blk = tile_l * out_dim_p * jnp.dtype(out_dtype).itemsize
    lhs_bytes = tile_l * 3 * dim_p * 2
    f32_tmp = 4 * tile_l * out_dim_p * 4
    vmem_limit = int(min(2 * (in_blk + halo_blk + w_bytes + out_blk)
                         + lhs_bytes + f32_tmp + (8 << 20), 48 << 20))

    halo_step = tile_l // 8                     # halo block index stride (block size 8)
    kernel = functools.partial(_conv_down_ln_kernel, eps=eps, inv_n=1.0 / out_dim,
                               tile_l=tile_l, dim_p=dim_p)
    out = pl.pallas_call(
        kernel,
        out_shape=jax.ShapeDtypeStruct((B, L_out_pad, out_dim_p), out_dtype),
        grid_spec=pltpu.PrefetchScalarGridSpec(
            num_scalar_prefetch=0,
            grid=(B, n_l_tiles),
            in_specs=[
                # main block: taps 0 & 1 of this tile
                pl.BlockSpec((pl.Squeezed(), tile_l, 2 * dim_p),
                             lambda b, l: (b, l, 0)),
                # halo block (same array): first row past this tile -> last tap-2 row
                pl.BlockSpec((pl.Squeezed(), 8, 2 * dim_p),
                             lambda b, l: (b, (l + 1) * halo_step, 0)),
                pl.BlockSpec((3 * dim_p, out_dim_p), lambda b, l: (0, 0)),
                pl.BlockSpec((1, out_dim_p), lambda b, l: (0, 0)),
                pl.BlockSpec((1, out_dim_p), lambda b, l: (0, 0)),
            ],
            out_specs=pl.BlockSpec((pl.Squeezed(), tile_l, out_dim_p),
                                   lambda b, l: (b, l, 0)),
            scratch_shapes=[pltpu.VMEM((tile_l, 3 * dim_p), jnp.bfloat16)],
        ),
        compiler_params=pltpu.CompilerParams(
            dimension_semantics=("parallel", "parallel"),
            vmem_limit_bytes=vmem_limit),
    )(x_pair, x_pair, w_cat, g2d, b2d)

    if L_out_pad != L_out or out_dim_p != out_dim:
        out = out[:, :L_out, :out_dim]
    return out


def _reference(x, conv_weight, gamma, beta, eps=1e-5):
    # Pure-JAX reference mirroring the PyTorch module (bf16 conv inputs to match
    # the kernel's MXU dtype, f32 accumulation, f32 LayerNorm).
    x_ncl = jnp.transpose(x, (0, 2, 1)).astype(jnp.bfloat16)   # (B, dim, L)
    w = conv_weight.astype(jnp.bfloat16)
    y = lax.conv_general_dilated(
        x_ncl, w, window_strides=(2,), padding=[(1, 1)],
        dimension_numbers=('NCH', 'OIH', 'NCH'),
        preferred_element_type=jnp.float32)
    y = jnp.transpose(y, (0, 2, 1))                            # (B, L_out, 2*dim)
    mean = jnp.mean(y, axis=-1, keepdims=True)
    var = jnp.mean((y - mean) ** 2, axis=-1, keepdims=True)
    return ((y - mean) * lax.rsqrt(var + eps) * gamma + beta).astype(x.dtype)


if __name__ == "__main__":
    key = jax.random.PRNGKey(0)

    def _run_case(B, L, dim):
        kx, kw, kg, kb = jax.random.split(jax.random.fold_in(key, L * dim + B), 4)
        x = jax.random.normal(kx, (B, L, dim), dtype=jnp.float32)
        # Conv1d weight shape: (out_channels=2*dim, in_channels=dim, kernel=3)
        conv_weight = jax.random.normal(kw, (2 * dim, dim, 3), dtype=jnp.float32) * 0.1
        gamma = 1.0 + 0.1 * jax.random.normal(kg, (2 * dim,), dtype=jnp.float32)
        beta = 0.1 * jax.random.normal(kb, (2 * dim,), dtype=jnp.float32)

        out = conv_downsampler(x, conv_weight, gamma, beta)
        jax.block_until_ready(out)

        ref = _reference(x, conv_weight, gamma, beta)
        L_out = (L - 1) // 2 + 1
        assert out.shape == (B, L_out, 2 * dim), (out.shape, (B, L_out, 2 * dim))
        assert jnp.allclose(out, ref, atol=2e-3, rtol=2e-3), (
            float(jnp.max(jnp.abs(out - ref))))

    # Small shape consistent with the module spec (exercises channel padding).
    _run_case(B=2, L=16, dim=4)
    # B==1 path (grid-evenness split) with ragged L_out.
    _run_case(B=1, L=70, dim=8)
    # Moderate shape: multi-tile path, cross-tile halo, lane-aligned dim=128.
    _run_case(B=2, L=2051, dim=128)

    print("KERNEL_OK")
</pallas_src>

<mosaic_0001>
module attributes {stable_mosaic.version = 11 : i64} {
  func.func @_conv_down_ln_kernel(%arg0: i32, %arg1: i32, %arg2: memref<1x8x256xbf16, #tpu.memory_space<vmem>>, %arg3: memref<1x8x256xbf16, #tpu.memory_space<vmem>>, %arg4: memref<384x256xbf16, #tpu.memory_space<vmem>>, %arg5: memref<1x256xf32, #tpu.memory_space<vmem>>, %arg6: memref<1x256xf32, #tpu.memory_space<vmem>>, %arg7: memref<1x8x256xf32, #tpu.memory_space<vmem>>, %arg8: memref<8x384xbf16, #tpu.memory_space<vmem>>) attributes {dimension_semantics = [#tpu.dimension_semantics<parallel>, #tpu.dimension_semantics<parallel>], iteration_bounds = array<i64: 2, 1>, scalar_prefetch = 0 : i64, scratch_operands = 1 : i64, tpu.core_type = #tpu.core_type<tc>, window_params = [{transform_indices = @transform_0, window_bounds = array<i64: 1, 8, 256>}, {transform_indices = @transform_1, window_bounds = array<i64: 1, 8, 256>}, {pipeline_mode = #tpu.pipeline_mode<synchronous>, transform_indices = @transform_2, window_bounds = array<i64: 384, 256>}, {pipeline_mode = #tpu.pipeline_mode<synchronous>, transform_indices = @transform_3, window_bounds = array<i64: 1, 256>}, {pipeline_mode = #tpu.pipeline_mode<synchronous>, transform_indices = @transform_4, window_bounds = array<i64: 1, 256>}, {transform_indices = @transform_5, window_bounds = array<i64: 1, 8, 256>}]} {
    %c0 = arith.constant 0 : index
    %c0_0 = arith.constant 0 : index
    %c0_1 = arith.constant 0 : index
    %0 = vector.load %arg2[%c0, %c0_0, %c0_1] : memref<1x8x256xbf16, #tpu.memory_space<vmem>>, vector<1x8x256xbf16>
    %1 = vector.shape_cast %0 : vector<1x8x256xbf16> to vector<8x256xbf16>
    %c0_2 = arith.constant 0 : index
    %c0_3 = arith.constant 0 : index
    %2 = vector.load %arg8[%c0_2, %c0_3] : memref<8x384xbf16, #tpu.memory_space<vmem>>, vector<8x256xbf16>
    tpu.vector_store %arg8[%c0_2, %c0_3], %1 {strides = array<i32>} : memref<8x384xbf16, #tpu.memory_space<vmem>>, vector<8x256xbf16>,
    %c0_4 = arith.constant 0 : index
    %c1 = arith.constant 1 : index
    %c0_5 = arith.constant 0 : index
    %3 = vector.load %arg2[%c0_4, %c1, %c0_5] : memref<1x8x256xbf16, #tpu.memory_space<vmem>>, vector<1x7x128xbf16>
    %4 = vector.shape_cast %3 : vector<1x7x128xbf16> to vector<7x128xbf16>
    %c0_6 = arith.constant 0 : index
    %c256 = arith.constant 256 : index
    %5 = vector.load %arg8[%c0_6, %c256] : memref<8x384xbf16, #tpu.memory_space<vmem>>, vector<7x128xbf16>
    tpu.vector_store %arg8[%c0_6, %c256], %4 {strides = array<i32>} : memref<8x384xbf16, #tpu.memory_space<vmem>>, vector<7x128xbf16>,
    %c0_7 = arith.constant 0 : index
    %c0_8 = arith.constant 0 : index
    %c0_9 = arith.constant 0 : index
    %6 = vector.load %arg3[%c0_7, %c0_8, %c0_9] : memref<1x8x256xbf16, #tpu.memory_space<vmem>>, vector<1x1x128xbf16>
    %7 = vector.shape_cast %6 : vector<1x1x128xbf16> to vector<1x128xbf16>
    %c7 = arith.constant 7 : index
    %c256_10 = arith.constant 256 : index
    %8 = vector.load %arg8[%c7, %c256_10] : memref<8x384xbf16, #tpu.memory_space<vmem>>, vector<1x128xbf16>
    tpu.vector_store %arg8[%c7, %c256_10], %7 {strides = array<i32>} : memref<8x384xbf16, #tpu.memory_space<vmem>>, vector<1x128xbf16>,
    %c0_11 = arith.constant 0 : index
    %c0_12 = arith.constant 0 : index
    %9 = vector.load %arg8[%c0_11, %c0_12] : memref<8x384xbf16, #tpu.memory_space<vmem>>, vector<8x384xbf16>
    %c0_13 = arith.constant 0 : index
    %c0_14 = arith.constant 0 : index
    %10 = vector.load %arg4[%c0_13, %c0_14] : memref<384x256xbf16, #tpu.memory_space<vmem>>, vector<384x256xbf16>
    %cst = arith.constant dense<0.000000e+00> : vector<8x256xf32>
    %11 = tpu.matmul %9, %10, %cst {dimension_numbers = #tpu.dot_dimension_numbers<[1], [0], [0], [1], [0, 0, 1, 1], [], []>} : vector<8x384xbf16>, vector<384x256xbf16>, vector<8x256xf32> -> vector<8x256xf32>
    %cst_15 = arith.constant dense<0.000000e+00> : vector<8xf32>
    %12 = vector.multi_reduction <add>, %11, %cst_15 [1] : vector<8x256xf32> to vector<8xf32>
    %13 = vector.shape_cast %12 : vector<8xf32> to vector<8x1xf32>
    %14 = arith.mulf %11, %11 : vector<8x256xf32>
    %cst_16 = arith.constant dense<0.000000e+00> : vector<8xf32>
    %15 = vector.multi_reduction <add>, %14, %cst_16 [1] : vector<8x256xf32> to vector<8xf32>
    %16 = vector.shape_cast %15 : vector<8xf32> to vector<8x1xf32>
    %cst_17 = arith.constant 1.250000e-01 : f32
    %17 = vector.broadcast %cst_17 : f32 to vector<8x1xf32>
    %18 = arith.mulf %13, %17 : vector<8x1xf32>
    %cst_18 = arith.constant 1.250000e-01 : f32
    %19 = vector.broadcast %cst_18 : f32 to vector<8x1xf32>
    %20 = arith.mulf %16, %19 : vector<8x1xf32>
    %21 = arith.mulf %18, %18 : vector<8x1xf32>
    %22 = arith.subf %20, %21 : vector<8x1xf32>
    %cst_19 = arith.constant 0.000000e+00 : f32
    %23 = vector.broadcast %cst_19 : f32 to vector<8x1xf32>
    %24 = arith.maximumf %22, %23 : vector<8x1xf32>
    %cst_20 = arith.constant 9.99999974E-6 : f32
    %25 = vector.broadcast %cst_20 : f32 to vector<8x1xf32>
    %26 = arith.addf %24, %25 : vector<8x1xf32>
    %27 = math.rsqrt %26 : vector<8x1xf32>
    %c0_21 = arith.constant 0 : index
    %c0_22 = arith.constant 0 : index
    %28 = vector.load %arg5[%c0_21, %c0_22] : memref<1x256xf32, #tpu.memory_space<vmem>>, vector<1x256xf32>
    %29 = vector.broadcast %28 : vector<1x256xf32> to vector<8x256xf32>
    %30 = vector.broadcast %27 : vector<8x1xf32> to vector<8x256xf32>
    %31 = arith.mulf %29, %30 : vector<8x256xf32>
    %c0_23 = arith.constant 0 : index
    %c0_24 = arith.constant 0 : index
    %32 = vector.load %arg6[%c0_23, %c0_24] : memref<1x256xf32, #tpu.memory_space<vmem>>, vector<1x256xf32>
    %33 = vector.broadcast %18 : vector<8x1xf32> to vector<8x256xf32>
    %34 = arith.mulf %33, %31 : vector<8x256xf32>
    %35 = vector.broadcast %32 : vector<1x256xf32> to vector<8x256xf32>
    %36 = arith.subf %35, %34 : vector<8x256xf32>
    %37 = arith.mulf %11, %31 : vector<8x256xf32>
    %38 = arith.addf %37, %36 : vector<8x256xf32>
    %c0_25 = arith.constant 0 : index
    %c0_26 = arith.constant 0 : index
    %c0_27 = arith.constant 0 : index
    %39 = vector.load %arg7[%c0_25, %c0_26, %c0_27] : memref<1x8x256xf32, #tpu.memory_space<vmem>>, vector<1x8x256xf32>
    %40 = vector.shape_cast %39 : vector<1x8x256xf32> to vector<8x256xf32>
    %41 = vector.shape_cast %38 : vector<8x256xf32> to vector<1x8x256xf32>
    tpu.vector_store %arg7[%c0_25, %c0_26, %c0_27], %41 {strides = array<i32>} : memref<1x8x256xf32, #tpu.memory_space<vmem>>, vector<1x8x256xf32>,
    return
  }
  func.func @transform_0(%arg0: i32, %arg1: i32) -> (i32, i32, i32) {
    %c0_i32 = arith.constant 0 : i32
    %c0_i32_0 = arith.constant 0 : i32
    return %arg0, %arg1, %c0_i32 : i32, i32, i32
  }
  func.func @transform_1(%arg0: i32, %arg1: i32) -> (i32, i32, i32) {
    %c1_i32 = arith.constant 1 : i32
    %0 = arith.addi %arg1, %c1_i32 : i32
    %c1_i32_0 = arith.constant 1 : i32
    %1 = arith.muli %0, %c1_i32_0 : i32
    %c0_i32 = arith.constant 0 : i32
    %c0_i32_1 = arith.constant 0 : i32
    return %arg0, %1, %c0_i32 : i32, i32, i32
  }
  func.func @transform_2(%arg0: i32, %arg1: i32) -> (i32, i32) {
    %c0_i32 = arith.constant 0 : i32
    %c0_i32_0 = arith.constant 0 : i32
    %c0_i32_1 = arith.constant 0 : i32
    return %c0_i32, %c0_i32_0 : i32, i32
  }
  func.func @transform_3(%arg0: i32, %arg1: i32) -> (i32, i32) {
    %c0_i32 = arith.constant 0 : i32
    %c0_i32_0 = arith.constant 0 : i32
    %c0_i32_1 = arith.constant 0 : i32
    return %c0_i32, %c0_i32_0 : i32, i32
  }
  func.func @transform_4(%arg0: i32, %arg1: i32) -> (i32, i32) {
    %c0_i32 = arith.constant 0 : i32
    %c0_i32_0 = arith.constant 0 : i32
    %c0_i32_1 = arith.constant 0 : i32
    return %c0_i32, %c0_i32_0 : i32, i32
  }
  func.func @transform_5(%arg0: i32, %arg1: i32) -> (i32, i32, i32) {
    %c0_i32 = arith.constant 0 : i32
    %c0_i32_0 = arith.constant 0 : i32
    return %arg0, %arg1, %c0_i32 : i32, i32, i32
  }
}

</mosaic_0001>

<bundles_post_ra>
// kernel: tpu_custom_call.1
= control target key start
LH: loop header
LB: loop body
LE: loop exit
PB: predicated region body
PF: predicated region fallthrough
CT: control target
= control target key end

     0   :  { %s1737_s0 = inlined_call_operand.hbm [shape: bf16[2,16,256], index: 0, kind: input, shape index: {}]   ;;  %s1738_s1 = inlined_call_operand.hbm [shape: bf16[2,16,256], index: 1, kind: input, shape index: {}]   ;;  %s1739_s2 = inlined_call_operand.hbm [shape: bf16[384,256], index: 2, kind: input, shape index: {}]   ;;  %s1740_s3 = inlined_call_operand.vmem [shape: f32[1,256], index: 3, kind: input, shape index: {}]   ;;  %s1741_s4 = inlined_call_operand.hbm [shape: f32[1,256], index: 4, kind: input, shape index: {}]   ;;  %s1742_s5 = inlined_call_operand.hbm [shape: f32[2,8,256], index: 5, kind: output, shape index: {}]  }
   0x1   :  { %1747 = sst [smem:[#allocation22_spill]] %s1739_s2 }
   0x2   :  { %1748 = sst [smem:[#allocation23_spill]] %s1741_s4 }
   0x3   :  { %10 = vsyncpa [#allocation4], 0 }
   0x4   :  { %12 = vsyncpa [#allocation4 + $0x1], 0 }
   0x5   :  { %13 = vsyncpa [#allocation7], 0 }
   0x6   :  { %15 = vsyncpa [#allocation7 + $0x1], 0 }
   0x7   :  { %16 = vsyncpa [#allocation10], 0 }
   0x8   :  { %17 = vsyncpa [#allocation5], 0 }
   0x9   :  { %19 = vsyncpa [#allocation5 + $0x1], 0  ;;  %s1555_s18 = smov 0   ;;  %s1557_s19 = smov 0  }
   0xa   :  { %s1559_s20 = smov 0   ;;  %s1561_s21 = smov 0  }
   0xb   :  { %s1563_s22 = smov 0   ;;  %s1565_s23 = smov 0  }
   0xc LB: > { %1749 = sst [smem:[#allocation17_spill]] %s1507_s20  ;;  %s1586_s24 = sadd.s32 4294967295, %s1519_s23   ;;  %s1519_s23 = sphi %s1565_s23, %s25_s23   ;;  %s1515_s22 = sphi %s1563_s22, %s1767_s22   ;;  %s1511_s21 = sphi %s1561_s21, %s1766_s21   ;;  %s1507_s20 = sphi %s1559_s20, %s1765_s20   ;;  %s1503_s19 = sphi %s1557_s19, %s1769_s19   ;;  %s1499_s18 = sphi %s1555_s18, %s1768_s18  }
   0xd   : > { %1750 = sst [smem:[#allocation18_spill]] %s1515_s22  ;;  %p949_p0 = scmp.ge.s32.totalorder %s1519_s23, 1 }
   0xe   : > { %p60_p1 = scmp.eq.s32.totalorder %s1586_s24, 0  ;;  %p191_p2 = scmp.lt.s32.totalorder %s1519_s23, 3 }
   0xf   : > { %s1751_s2 = sld [smem:[#allocation22_spill]]  ;;  %s1521_s29 = smov [#allocation8]  }
  0x10   : > { %p1594_p3 = pnand %p949_p0, %p191_p2  ;;  %s204_s30 = sshll.u32 %s1521_s29, 4  ;;  %s205_s30 = int_to_ptr.vmem [resolvable:$true] %s204_s30 }
  0x11   : > { %p952_p6 = scmp.ge.s32.totalorder %s1519_s23, 2  ;;  %s1753_s4 = sld [smem:[#allocation23_spill]] }
  0x12   : > { %p1227_p4 = pneg %p1594_p3  ;;  %s1522_s9 = smov 128  }
  0x13   : > { %s1523_s10 = smov 8   ;;  %s1524_s11 = smov [#allocation9]  }
  0x14   : > { %p1228_p5 = pnand %p1227_p4, %p60_p1  ;;  %s222_s12 = sshll.u32 %s1524_s11, 4  ;;  %s223_s12 = int_to_ptr.vmem [resolvable:$true] %s222_s12 }
  0x15   : > { %s202_s27 = sshll.u32 %s1751_s2, 4  ;;  %s948_s13 = sadd.s32 4294967294, %s1519_s23   ;;  %s203_s27 = int_to_ptr.hbm [resolvable:$true] %s202_s27 }
  0x16   : > { %1230 = dma.hbm_to_vmem [thread:$0]  (!%p1228_p5), %s203_s27, 6144, %s205_s30, [#allocation7], %s1522_s9, %s1522_s9, %s1523_s10  }
  0x17   : > { %s220_s8 = sshll.u32 %s1753_s4, 4  ;;  %s37_s14 = sadd.s32 1, %s1515_s22  ;;  %s221_s8 = int_to_ptr.hbm [resolvable:$true] %s220_s8 }
  0x18   : > { %1233 = dma.hbm_to_vmem [thread:$0]  (!%p1228_p5), %s221_s8, 32, %s223_s12, [#allocation10]  }
  0x19   : > { %p39_p7 = scmp.ge.s32.totalorder %s37_s14, 2  ;;  %s46_s15 = sadd.s32 1, %s1507_s20 }
  0x1a   : > { %p53_p8 = scmp.ne.s32.totalorder %s1507_s20, %s1503_s19  ;;  %p54_p9 = scmp.eq.s32.totalorder %s1519_s23, 0 }
  0x1b   : > { %s1771_s14 = smov (%p39_p7, %s37_s14), 0  ;;  %p59_p11 = scmp.ne.s32.totalorder %s1503_s19, %s1499_s18 }
  0x1c   : > { %1754 = sst [smem:[#allocation19_spill]] %s1771_s14  ;;  %p1614_p10 = por %p54_p9, %p53_p8 }
  0x1d   : > { %s41_s17 = ssub.s32 %s1515_s22, %s1771_s14  ;;  %p178_p12 = scmp.eq.s32.totalorder %s1586_s24, 1 }
  0x1e   : > { %p44_p13 = scmp.eq.s32.totalorder %s41_s17, 0  ;;  %p1625_p0 = por %p60_p1, %p59_p11 }
  0x1f   : > { %p1629_p2 = por %p178_p12, %p53_p8  ;;  %p184_p4 = scmp.eq.s32.totalorder %s948_s13, 1 }
  0x20   : > { %s1634_s27 = scalar_select %p44_p13, %s1507_s20, %s46_s15  }
  0x21   : > { %p1636_p5 = por %p184_p4, %p59_p11  ;;  %p1247_p7 = scmp.lt.s32.totalorder %s1519_s23, 2 }
  0x22   : > { %1758 = sst [smem:[#allocation20_spill]] %s1634_s27  ;;  %s233_s30 = sand.u32 1, %s1507_s20  }
  0x23   : > { %s1759_s29 = scalar_select %p1636_p5, 1, 0 }
  0x24   : > { %s1162_s6 = sshll.u32 %s1515_s22, 4  ;;  %s953_s7 = sshll.u32 %s233_s30, 3 }
  0x25   : > { %1760 = sst [smem:[#allocation21_spill]] %s1759_s29  ;;  %s244_s10 = scalar_lea.hbm %s1737_s0, %s1162_s6 }
  0x26   : > { %s246_s11 = sshll.u32 %s244_s10, 4  ;;  %s237_s12 = scalar_lea.vmem [#allocation3], %s953_s7  ;;  %s247_s11 = int_to_ptr.hbm [resolvable:$true] %s246_s11 }
  0x27   : > { %s248_s17 = sshll.u32 %s237_s12, 4  ;;  %p1235_p8 = pnand %p1247_p7, %p1614_p10  ;;  %s249_s17 = int_to_ptr.vmem [resolvable:$true] %s248_s17 }
  0x28   : > { %s860_s2 = scalar_lea.hbm %s1738_s1, %s1162_s6  ;;  %s255_s4 = sand.u32 1, %s1519_s23  }
  0x29   : > { %s234_s14 = scalar_lea.sflag [#allocation4], %s233_s30  ;;  %s861_s22 = scalar_lea.hbm %s860_s2, 8 }
  0x2a   : > { %1237 = dma.hbm_to_vmem [thread:$0]  (!%p1235_p8), %s247_s11, 128, %s249_s17, %s234_s14  }
  0x2b   : > { %s259_s27 = scalar_lea.vmem [#allocation6], %s953_s7  ;;  %s269_s29 = sshll.u32 %s861_s22, 4  ;;  %s270_s29 = int_to_ptr.hbm [resolvable:$true] %s269_s29 }
  0x2c   : > { %s271_s20 = sshll.u32 %s259_s27, 4  ;;  %s256_s8 = scalar_lea.sflag [#allocation7], %s255_s4  ;;  %s272_s20 = int_to_ptr.vmem [resolvable:$true] %s271_s20 }
  0x2d   : > { %1240 = dma.hbm_to_vmem [thread:$0]  (!%p1235_p8), %s270_s29, 128, %s272_s20, %s256_s8  }
  0x2e   : > { %280 = sbr.rel (%p1594_p3) target bundleno = 419 (0x1a3), region = 40  ;;  %s1655_s16 = sand.u32 (!%p1594_p3), 1, %s1503_s19  }
  0x2f   : > { %s960_s6 = sshll.u32 (!%p1594_p3), %s1655_s16, 3  ;;  %s283_s30 = scalar_lea.sflag (!%p1594_p3), [#allocation4], %s1655_s16 }
  0x30   : > { %s1659_s14 = scalar_lea.vmem (!%p1594_p3), [#allocation3], %s960_s6 }
  0x33   : > { %1478 = dma.done.wait (%p1625_p0), %s283_s30, 128  }
  0x34   : > { %1480 = vsyncadd (%p1625_p0), %s283_s30, 4294967168  ;;  %s292_s2 = sand.u32 1, %s1586_s24   ;;  %s1666_s20 = scalar_lea.vmem [#allocation6], %s960_s6 }
  0x35   : > { %s293_s4 = scalar_lea.sflag [#allocation7], %s292_s2 }
  0x36   : > { %1482 = dma.done.wait (%p1625_p0), %s293_s4, 128  }
  0x37   : > { %1484 = vsyncadd (%p1625_p0), %s293_s4, 4294967168 }
  0x38   : > { %1486 = dma.done.wait (%p60_p1), [#allocation7], 6144  }
  0x39   : > { %1488 = vsyncadd (%p60_p1), [#allocation7], 4294961152 }
  0x3a   : > { %1490 = dma.done.wait (%p60_p1), [#allocation10], 32  }
  0x3b   : > { %1492 = vsyncadd (%p60_p1), [#allocation10], 4294967264  ;;  %v1023_v0 = vld [vmem:[#allocation8 + $0x70] sm:$0xf]  ;;  %v1179_v1 = vld [vmem:[#allocation8 + $0x74] sm:$0xf0] }
  0x3c   : > { %v1087_v2 = vld [vmem:[#allocation8 + $0xf0] sm:$0xf]  ;;  %v1024_v3 = vor.u32 %v1179_v1, %v1023_v0  ;;  %v1195_v4 = vld [vmem:[#allocation8 + $0xf4] sm:$0xf0]  ;;  %v1015_v5 = vld [vmem:[#allocation8 + $0x60] sm:$0xf] }
  0x3d   : > { %v1177_v6 = vld [vmem:[#allocation8 + $0x64] sm:$0xf0]  ;;  %v1088_v7 = vor.u32 %v1195_v4, %v1087_v2  ;;  %v1079_v8 = vld [vmem:[#allocation8 + $0xe0] sm:$0xf]  ;;  %v1007_v11 = vld [vmem:[#allocation8 + $0x50] sm:$0xf] }
  0x3e   : > { %v1193_v9 = vld [vmem:[#allocation8 + $0xe4] sm:$0xf0]  ;;  %672 = vmatpush.bf16.msra.mxu0 %v1024_v3  ;;  %v1016_v10 = vor.u32 %v1177_v6, %v1015_v5  ;;  %v1175_v13 = vld [vmem:[#allocation8 + $0x54] sm:$0xf0]  ;;  %v1151_v14 = vld [vmem:[#allocation8 + $0x170] sm:$0xf] }
  0x3f   : > { %685 = vmatpush.bf16.msra.mxu1 %v1088_v7  ;;  %v1080_v12 = vor.u32 %v1193_v9, %v1079_v8  ;;  %v1211_v15 = vld [vmem:[#allocation8 + $0x174] sm:$0xf0]  ;;  %v1071_v16 = vld [vmem:[#allocation8 + $0xd0] sm:$0xf]  ;;  %v1143_v19 = vld [vmem:[#allocation8 + $0x160] sm:$0xf]  ;;  %v1008_v22 = vor.u32 %v1175_v13, %v1007_v11 }
  0x40   : > { %v1191_v17 = vld [vmem:[#allocation8 + $0xd4] sm:$0xf0]  ;;  %v1152_v18 = vor.u32 %v1211_v15, %v1151_v14  ;;  %v1209_v20 = vld [vmem:[#allocation8 + $0x164] sm:$0xf0]  ;;  %v1178_v21 = vld [vmem:[#allocation8 + $0x74] sm:$0xf] }
  0x41   : > { %v999_v23 = vld [vmem:[#allocation8 + $0x40] sm:$0xf]  ;;  %v1173_v24 = vld [vmem:[#allocation8 + $0x44] sm:$0xf0]  ;;  %v1144_v25 = vor.u32 %v1209_v20, %v1143_v19  ;;  %v1025_v26 = vld [vmem:[#allocation8 + $0x78] sm:$0xf0]  ;;  %v1072_v27 = vor.u32 %v1191_v17, %v1071_v16 }
  0x42   : > { %673 = vmatpush.bf16.msra.mxu0 %v1016_v10  ;;  %698 = vmatpush.bf16.msra.mxu2 %v1152_v18  ;;  %v1063_v28 = vld [vmem:[#allocation8 + $0xc0] sm:$0xf]  ;;  %v1189_v29 = vld [vmem:[#allocation8 + $0xc4] sm:$0xf0]  ;;  %v1028_v30 = vor.u32 %v1178_v21, %v1025_v26  ;;  %v1135_v31 = vld [vmem:[#allocation8 + $0x150] sm:$0xf]  ;;  %v1000_v36 = vor.u32 %v1173_v24, %v999_v23 }
  0x43   : > { %686 = vmatpush.bf16.msra.mxu1 %v1080_v12  ;;  %v1207_v32 = vld [vmem:[#allocation8 + $0x154] sm:$0xf0]  ;;  %v1176_v33 = vld [vmem:[#allocation8 + $0x64] sm:$0xf]  ;;  %v1017_v34 = vld [vmem:[#allocation8 + $0x68] sm:$0xf0]  ;;  %v1064_v41 = vor.u32 %v1189_v29, %v1063_v28 }
  0x44   : > { %711 = vmatpush.bf16.msra.mxu3 %v1028_v30  ;;  %v1020_v35 = vor.u32 %v1176_v33, %v1017_v34  ;;  %v991_v37 = vld [vmem:[#allocation8 + $0x30] sm:$0xf]  ;;  %v1171_v38 = vld [vmem:[#allocation8 + $0x34] sm:$0xf0]  ;;  %v1136_v39 = vor.u32 %v1207_v32, %v1135_v31  ;;  %v1127_v40 = vld [vmem:[#allocation8 + $0x140] sm:$0xf] }
  0x45   : > { %v1205_v42 = vld [vmem:[#allocation8 + $0x144] sm:$0xf0]  ;;  %v1174_v43 = vld [vmem:[#allocation8 + $0x54] sm:$0xf]  ;;  %v1009_v44 = vld [vmem:[#allocation8 + $0x58] sm:$0xf0]  ;;  %v992_v48 = vor.u32 %v1171_v38, %v991_v37 }
  0x46   : > { %674 = vmatpush.bf16.msra.mxu0 %v1008_v22  ;;  %699 = vmatpush.bf16.msra.mxu2 %v1144_v25  ;;  %v1055_v45 = vld [vmem:[#allocation8 + $0xb0] sm:$0xf]  ;;  %v1187_v46 = vld [vmem:[#allocation8 + $0xb4] sm:$0xf0]  ;;  %v1012_v47 = vor.u32 %v1174_v43, %v1009_v44  ;;  %v983_v49 = vld [vmem:[#allocation8 + $0x20] sm:$0xf]  ;;  %v1128_v50 = vor.u32 %v1205_v42, %v1127_v40 }
  0x47   : > { %687 = vmatpush.bf16.msra.mxu1 %v1072_v27  ;;  %v1172_v51 = vld [vmem:[#allocation8 + $0x44] sm:$0xf]  ;;  %v1001_v52 = vld [vmem:[#allocation8 + $0x48] sm:$0xf0]  ;;  %v1056_v53 = vor.u32 %v1187_v46, %v1055_v45  ;;  %v1169_v54 = vld [vmem:[#allocation8 + $0x24] sm:$0xf0] }
  0x48   : > { %712 = vmatpush.bf16.msra.mxu3 %v1020_v35  ;;  %v1119_v55 = vld [vmem:[#allocation8 + $0x130] sm:$0xf]  ;;  %v1203_v56 = vld [vmem:[#allocation8 + $0x134] sm:$0xf0]  ;;  %v1047_v57 = vld [vmem:[#allocation8 + $0xa0] sm:$0xf]  ;;  %v1004_v59 = vor.u32 %v1172_v51, %v1001_v52  ;;  %v984_v60 = vor.u32 %v1169_v54, %v983_v49 }
  0x49   : > { %v1185_v58 = vld [vmem:[#allocation8 + $0xa4] sm:$0xf0]  ;;  %v975_v61 = vld [vmem:[#allocation8 + $0x10] sm:$0xf]  ;;  %v1120_v62 = vor.u32 %v1203_v56, %v1119_v55  ;;  %v1170_v63 = vld [vmem:[#allocation8 + $0x34] sm:$0xf] }
  0x4a   : > { %675 = vmatpush.bf16.msra.mxu0 %v1000_v36  ;;  %700 = vmatpush.bf16.msra.mxu2 %v1136_v39  ;;  %v993_v0 = vld [vmem:[#allocation8 + $0x38] sm:$0xf0]  ;;  %v1048_v1 = vor.u32 %v1185_v58, %v1047_v57  ;;  %v1167_v2 = vld [vmem:[#allocation8 + $0x14] sm:$0xf0]  ;;  %v1111_v3 = vld [vmem:[#allocation8 + $0x120] sm:$0xf] }
  0x4b   : > { %688 = vmatpush.bf16.msra.mxu1 %v1064_v41  ;;  %v1201_v4 = vld [vmem:[#allocation8 + $0x124] sm:$0xf0]  ;;  %v1039_v5 = vld [vmem:[#allocation8 + $0x90] sm:$0xf]  ;;  %v1183_v6 = vld [vmem:[#allocation8 + $0x94] sm:$0xf0]  ;;  %v996_v9 = vor.u32 %v1170_v63, %v993_v0  ;;  %v976_v13 = vor.u32 %v1167_v2, %v975_v61 }
  0x4c   : > { %713 = vmatpush.bf16.msra.mxu3 %v1012_v47  ;;  %v967_v7 = vld [vmem:[#allocation8] sm:$0xf]  ;;  %v1165_v8 = vld [vmem:[#allocation8 + $0x4] sm:$0xf0]  ;;  %v1168_v10 = vld [vmem:[#allocation8 + $0x24] sm:$0xf]  ;;  %v1112_v16 = vor.u32 %v1201_v4, %v1111_v3  ;;  %v1040_v17 = vor.u32 %v1183_v6, %v1039_v5 }
  0x4d   : > { %v985_v11 = vld [vmem:[#allocation8 + $0x28] sm:$0xf0]  ;;  %v1031_v14 = vld [vmem:[#allocation8 + $0x80] sm:$0xf]  ;;  %v1181_v15 = vld [vmem:[#allocation8 + $0x84] sm:$0xf0]  ;;  %v968_v29 = vor.u32 %v1165_v8, %v967_v7 }
  0x4e   : > { %676 = vmatpush.bf16.msra.mxu0 %v992_v48  ;;  %701 = vmatpush.bf16.msra.mxu2 %v1128_v50  ;;  %v340_v12 = vld [vmem:[%s1659_s14] sm:$0xff]  ;;  %v1194_v18 = vld [vmem:[#allocation8 + $0xf4] sm:$0xf]  ;;  %v1103_v19 = vld [vmem:[#allocation8 + $0x110] sm:$0xf]  ;;  %v988_v23 = vor.u32 %v1168_v10, %v985_v11  ;;  %vm353_vm0 = vcmask 1043456   ;;  %v1032_v34 = vor.u32 %v1181_v15, %v1031_v14 }
  0x4f   : > { %689 = vmatpush.bf16.msra.mxu1 %v1056_v53  ;;  %v1199_v20 = vld [vmem:[#allocation8 + $0x114] sm:$0xf0]  ;;  %v1089_v21 = vld [vmem:[#allocation8 + $0xf8] sm:$0xf0]  ;;  %v1210_v22 = vld [vmem:[#allocation8 + $0x174] sm:$0xf]  ;;  %v423_v26 = vunpack.c.l.b16 %v340_v12  ;;  %v424_v31 = vunpack.c.h.b16 %v340_v12 }
  0x50   : > { %714 = vmatpush.bf16.msra.mxu3 %v1004_v59  ;;  %v342_v24 = vld [vmem:[%s1659_s14] sm:$0xf]  ;;  %v1153_v25 = vld [vmem:[#allocation8 + $0x178] sm:$0xf0]  ;;  %v1104_v30 = vor.u32 %v1199_v20, %v1103_v19  ;;  %v1166_v32 = vld [vmem:[#allocation8 + $0x14] sm:$0xf]  ;;  %v1092_v35 = vor.u32 %v1194_v18, %v1089_v21 }
  0x51   : > { %v344_v27 = vshrl.u32 %v342_v24, 16  ;;  %v347_v28 = vshll.u32 %v342_v24, 16  ;;  %v977_v33 = vld [vmem:[#allocation8 + $0x18] sm:$0xf0]  ;;  %vm354_vm1 = vsmask.f32 3328  ;;  %v1156_v40 = vor.u32 %v1210_v22, %v1153_v25 }
  0x52   : > { %677 = vmatpush.bf16.msra.mxu0 %v984_v60  ;;  %702 = vmatpush.bf16.msra.mxu2 %v1120_v62  ;;  %v1095_v36 = vld [vmem:[#allocation8 + $0x100] sm:$0xf]  ;;  %v1197_v37 = vld [vmem:[#allocation8 + $0x104] sm:$0xf0]  ;;  %v1192_v41 = vld [vmem:[#allocation8 + $0xe4] sm:$0xf]  ;;  %v426_v45 = vpack.c.b16 %v423_v26, %v423_v26  ;;  %v980_v46 = vor.u32 %v1166_v32, %v977_v33  ;;  %v1688_v50 = vpack.c.b16 %v424_v31, %v424_v31 }
  0x53   : > { %690 = vmatpush.bf16.msra.mxu1 %v1048_v1  ;;  %v346_v38 = vrot.slane %v344_v27, 4  ;;  %v349_v39 = vrot.slane %v347_v28, 5  ;;  %v1081_v42 = vld [vmem:[#allocation8 + $0xe8] sm:$0xf0]  ;;  %v1208_v43 = vld [vmem:[#allocation8 + $0x164] sm:$0xf]  ;;  %vm1684_vm2 = vmand %vm353_vm0, %vm354_vm1  ;;  %v1096_v49 = vor.u32 %v1197_v37, %v1095_v36 }
  0x54   : > { %715 = vmatpush.bf16.msra.mxu3 %v996_v9  ;;  %v1145_v44 = vld [vmem:[#allocation8 + $0x168] sm:$0xf0]  ;;  %v356_v51 = vld [vmem:[#allocation2 + $0x8] sm:$0xf]  ;;  %v1164_v52 = vld [vmem:[#allocation8 + $0x4] sm:$0xf]  ;;  %v1084_v54 = vor.u32 %v1192_v41, %v1081_v42 }
  0x55   : > { %v350_v47 = vor.u32 %v349_v39, %v346_v38  ;;  %v969_v53 = vld [vmem:[#allocation8 + $0x8] sm:$0xf0]  ;;  %v359_v56 = vld [vmem:[%s1666_s20] sm:$0x1]  ;;  %v1148_v57 = vor.u32 %v1208_v43, %v1145_v44  ;;  %v1190_v58 = vld [vmem:[#allocation8 + $0xd4] sm:$0xf] }
  0x56   : > { %678 = vmatpush.bf16.msra.mxu0 %v976_v13  ;;  %703 = vmatpush.bf16.msra.mxu2 %v1112_v16  ;;  %v1073_v59 = vld [vmem:[#allocation8 + $0xd8] sm:$0xf0]  ;;  %v1206_v60 = vld [vmem:[#allocation8 + $0x154] sm:$0xf]  ;;  %v972_v63 = vor.u32 %v1164_v52, %v969_v53  ;;  %v361_v0 = vshll.u32 %v359_v56, 16  ;;  %vm365_vm3 = vcmask 1043459  }
  0x57   : > { %691 = vmatpush.bf16.msra.mxu1 %v1040_v17  ;;  %v351_v55 = vrot.slane %v350_v47, 4  ;;  %v1137_v61 = vld [vmem:[#allocation8 + $0x158] sm:$0xf0]  ;;  %v1076_v1 = vor.u32 %v1190_v58, %v1073_v59  ;;  %vm366_vm4 = vsmask.f32 7950  ;;  %s964_s28 = sshll.u32 %s1655_s16, 4 }
  0x58   : > { %716 = vmatpush.bf16.msra.mxu3 %v988_v23  ;;  %v1140_v2 = vor.u32 %v1206_v60, %v1137_v61  ;;  %v1188_v3 = vld [vmem:[#allocation8 + $0xc4] sm:$0xf]  ;;  %v1065_v4 = vld [vmem:[#allocation8 + $0xc8] sm:$0xf0]  ;;  %v363_v7 = vrot.slane %v361_v0, 5  ;;  %vm367_vm5 = vmand %vm365_vm3, %vm366_vm4  ;;  %s1212_s25 = sshll.u32 %s1511_s21, 4 }
  0x59   : > { %v357_v62 = vsel %vm1684_vm2, %v351_v55, %v356_v51  ;;  %v1204_v5 = vld [vmem:[#allocation8 + $0x144] sm:$0xf]  ;;  %v1129_v6 = vld [vmem:[#allocation8 + $0x148] sm:$0xf0]  ;;  %v1068_v8 = vor.u32 %v1188_v3, %v1065_v4  ;;  %v1186_v10 = vld [vmem:[#allocation8 + $0xb4] sm:$0xf]  ;;  %s812_s7 = scalar_lea.hbm %s1742_s5, %s1212_s25 }
  0x5a   : > { %679 = vmatpush.bf16.msra.mxu0 %v968_v29  ;;  %704 = vmatpush.bf16.msra.mxu2 %v1104_v30  ;;  %358 = vst [vmem:[#allocation2 + $0x8] sm:$0xf] %v357_v62  ;;  %v1132_v9 = vor.u32 %v1204_v5, %v1129_v6  ;;  %v1057_v11 = vld [vmem:[#allocation8 + $0xb8] sm:$0xf0]  ;;  %v1202_v13 = vld [vmem:[#allocation8 + $0x134] sm:$0xf] }
  0x5b   : > { %692 = vmatpush.bf16.msra.mxu1 %v1032_v34  ;;  %v1121_v14 = vld [vmem:[#allocation8 + $0x138] sm:$0xf0]  ;;  %v1060_v16 = vor.u32 %v1186_v10, %v1057_v11  ;;  %v1184_v18 = vld [vmem:[#allocation8 + $0xa4] sm:$0xf]  ;;  %v1049_v19 = vld [vmem:[#allocation8 + $0xa8] sm:$0xf0] }
  0x5c   : > { %717 = vmatpush.bf16.msra.mxu3 %v980_v46  ;;  %v1124_v17 = vor.u32 %v1202_v13, %v1121_v14  ;;  %v1200_v20 = vld [vmem:[#allocation8 + $0x124] sm:$0xf]  ;;  %v1113_v21 = vld [vmem:[#allocation8 + $0x128] sm:$0xf0]  ;;  %v1052_v22 = vor.u32 %v1184_v18, %v1049_v19  ;;  %v1182_v24 = vld [vmem:[#allocation8 + $0x94] sm:$0xf] }
  0x5d   : > { %680 = vmatmul.bf16.vlgmr.msra.gmra.mxu0 %v426_v45  ;;  %v1116_v23 = vor.u32 %v1200_v20, %v1113_v21  ;;  %v1041_v25 = vld [vmem:[#allocation8 + $0x98] sm:$0xf0]  ;;  %v1198_v26 = vld [vmem:[#allocation8 + $0x114] sm:$0xf]  ;;  %v1180_v32 = vld [vmem:[#allocation8 + $0x84] sm:$0xf] }
  0x5e   : > { %724 = vmatpush.bf16.msrb.mxu0 %v1092_v35  ;;  %705 = vmatpush.bf16.msra.mxu2 %v1096_v49  ;;  %v1105_v27 = vld [vmem:[#allocation8 + $0x118] sm:$0xf0]  ;;  %v1044_v30 = vor.u32 %v1182_v24, %v1041_v25  ;;  %v1033_v33 = vld [vmem:[#allocation8 + $0x88] sm:$0xf0]  ;;  %v1196_v35 = vld [vmem:[#allocation8 + $0x104] sm:$0xf] }
  0x5f   : > { %737 = vmatpush.bf16.msrb.mxu1 %v1156_v40  ;;  %v1108_v31 = vor.u32 %v1198_v26, %v1105_v27  ;;  %v1097_v36 = vld [vmem:[#allocation8 + $0x108] sm:$0xf0]  ;;  %v1036_v37 = vor.u32 %v1180_v32, %v1033_v33  ;;  %v774_v6 = vld [vmem:[%s1740_s3] sm:$0x3]  ;;  %s338_s9 = scalar_lea.vmem [#allocation11], %s964_s28  ;;  %s816_s21 = sshll.u32 %s812_s7, 4  ;;  %s817_s21 = int_to_ptr.hbm [resolvable:$true] %s816_s21 }
  0x60   : > { %693 = vmatmul.bf16.vlgmr.msra.gmra.mxu1 %v1688_v50  ;;  %718 = vmatpush.bf16.msra.mxu3 %v972_v63  ;;  %v1100_v38 = vor.u32 %v1196_v35, %v1097_v36  ;;  %v777_v10 = vperm.slane %v774_v6, 1  ;;  %s814_s10 = sshll.u32 %s338_s9, 4  ;;  %s799_s11 = scalar_lea.sflag [#allocation5], %s1655_s16  ;;  %s815_s10 = int_to_ptr.vmem [resolvable:$true] %s814_s10 }
  0x61   : > { %v368_v12 = vld [vmem:[#allocation2 + $0x8] sm:$0x8]  ;;  %s1439_s12 = sshra.s32 %s817_s21, 4  ;;  %s1445_s8 = scalar_lea.hbm %s1742_s5, 32  ;;  %s1440_s12 = int_to_ptr.hbm [resolvable:$true] %s1439_s12 }
  0x62   : > { %725 = vmatpush.bf16.msrb.mxu0 %v1084_v54  ;;  %v369_v15 = vsel %vm367_vm5, %v363_v7, %v368_v12  ;;  %v782_v12 = vld [vmem:[#allocation9] sm:$0x3]  ;;  %s1441_s17 = scalar_lea.hbm %s1440_s12, 16  ;;  %p1446_p10 = scmp.lt.s32.totalorder %s1440_s12, %s1742_s5 }
  0x63   : > { %738 = vmatpush.bf16.msrb.mxu1 %v1148_v57  ;;  %719 = vmatmul.bf16.vlgmr.msra.gmra.mxu3 %v426_v45  ;;  %370 = vst [vmem:[#allocation2 + $0x8] sm:$0x8] %v369_v15  ;;  %p1442_p1 = scmp.ne.s32.totalorder %s1440_s12, %s1441_s17  ;;  %p1447_p11 = scmp.lt.s32.totalorder %s1445_s8, %s1441_s17 }
  0x65   : > { %p1443_p3 = pnand %p1442_p1, %p1629_p2  ;;  %p1448_p12 = por %p1447_p11, %p1446_p10 }
  0x66   : > { %726 = vmatpush.bf16.msrb.mxu0 %v1076_v1 }
  0x67   : > { %739 = vmatpush.bf16.msrb.mxu1 %v1140_v2  ;;  %p1444_p9 = pneg %p1443_p3 }
  0x69   : > { %p1449_p13 = pnand %p1448_p12, %p1444_p9 }
  0x6a   : > { %727 = vmatpush.bf16.msrb.mxu0 %v1068_v8  ;;  %v372_v28 = vld [vmem:[#allocation2 + $0x8] sm:$0xf] }
  0x6b   : > { %740 = vmatpush.bf16.msrb.mxu1 %v1132_v9  ;;  %v425_v29 = vunpack.c.l.b16 %v372_v28  ;;  %v776_v9 = vperm.slane %v774_v6, 0 }
  0x6d   : > { %v428_v34 = vpack.c.b16 %v425_v29, %v425_v29 }
  0x6e   : > { %728 = vmatpush.bf16.msrb.mxu0 %v1060_v16  ;;  %v786_v16 = vperm.slane %v782_v12, 0 }
  0x6f   : > { %741 = vmatpush.bf16.msrb.mxu1 %v1124_v17  ;;  %706 = vmatmul.bf16.vlgmr.msra.gmra.mxu2 %v428_v34  ;;  %v787_v17 = vperm.slane %v782_v12, 1 }
  0x72   : > { %729 = vmatpush.bf16.msrb.mxu0 %v1052_v22 }
  0x73   : > { %742 = vmatpush.bf16.msrb.mxu1 %v1116_v23 }
  0x76   : > { %730 = vmatpush.bf16.msrb.mxu0 %v1044_v30 }
  0x77   : > { %743 = vmatpush.bf16.msrb.mxu1 %v1108_v31 }
  0x7a   : > { %731 = vmatpush.bf16.msrb.mxu0 %v1036_v37 }
  0x7b   : > { %744 = vmatpush.bf16.msrb.mxu1 %v1100_v38 }
  0x7d   : > { %732 = vmatmul.bf16.vlgmr.msrb.gmra.mxu0 %v1688_v50 }
  0x7e   : > { %745 = vmatmul.bf16.vlgmr.msrb.gmra.mxu1 %v428_v34 }
  0xda   : > { %v681_v39 = vpop.f32.mrf.mxu0 }
  0xdd   : > { %v694_v40 = vpop.f32.mrf.mxu1 }
  0xde   : > { %v695_v45 = vadd.f32 %v694_v40, %v681_v39 }
  0xe2   : > { %v683_v41 = vpop.f32.mrf.mxu0 }
  0xe5   : > { %v696_v42 = vpop.f32.mrf.mxu1 }
  0xe6   : > { %v720_v43 = vpop.f32.mrf.mxu3 }
  0xee   : > { %v722_v44 = vpop.f32.mrf.mxu3 }
  0xf2   : > { %v707_v46 = vpop.f32.mrf.mxu2 }
  0xf3   : > { %v708_v51 = vadd.f32 %v707_v46, %v695_v45 }
  0xf5   : > { %v753_v57 = vmul.f32 %v708_v51, %v708_v51 }
  0xfa   : > { %v733_v47 = vpop.f32.mrf.mxu0  ;;  %v709_v54 = vpop.f32.mrf.mxu2 }
  0xfb   : > { %v734_v48 = vadd.f32 %v733_v47, %v720_v43  ;;  %v746_v49 = vpop.f32.mrf.mxu1 }
  0xfd   : > { %v747_v52 = vadd.f32 %v746_v49, %v734_v48 }
  0xff   : > { %v750_v53 = vadd.f32 %v747_v52, %v708_v51  ;;  %v754_v50 = vmul.f32 %v747_v52, %v747_v52 }
 0x101   : > { %751 = vadd.xlane.f32.xlu0 %v750_v53  ;;  %v755_v58 = vadd.f32 %v754_v50, %v753_v57 }
 0x102   : > { %v735_v55 = vpop.f32.mrf.mxu0 }
 0x103   : > { %v748_v56 = vpop.f32.mrf.mxu1 }
 0x109   : > { %756 = vadd.xlane.f32.xlu0 %v755_v58 }
 0x174   : > { %v752_v59 = vpop.xlane.xlu0 %751 }
 0x175   : > { %v758_v60 = vmul.f32 0.125, %v752_v59 }
 0x177   : > { %v760_v62 = vmul.f32 %v758_v60, %v758_v60 }
 0x17c   : > { %v757_v61 = vpop.xlane.xlu0 %756 }
 0x17d   : > { %v759_v63 = vmul.f32 0.125, %v757_v61 }
 0x17f   : > { %v761_v0 = vsub.f32 %v759_v63, %v760_v62 }
 0x181   : > { %v762_v1 = vmax.f32 %v761_v0, 0.0 }
 0x183   : > { %v763_v2 = vadd.f32 1e-05, %v762_v1 }
 0x185   : > { %1303 = vrsqrt.f32 %v763_v2  ;;  %vm770_vm7 = vweird.f32 %v763_v2 }
 0x18b   : > { %v1304_v3 = vpop.eup %1303 }
 0x18c   : > { %v765_v4 = vmul.f32 %v1304_v3, %v763_v2  ;;  %vm771_vm6 = vweird.f32 %v1304_v3 }
 0x18d   : > { %vm772_vm8 = vmor %vm770_vm7, %vm771_vm6 }
 0x18e   : > { %v766_v5 = vmul.f32 %v1304_v3, %v765_v4 }
 0x190   : > { %v767_v7 = vmul.f32 0.5, %v766_v5 }
 0x192   : > { %v768_v8 = vsub.f32 1.5, %v767_v7 }
 0x194   : > { %v769_v11 = vmul.f32 %v1304_v3, %v768_v8 }
 0x196   : > { %v773_v13 = vsel %vm772_vm8, %v1304_v3, %v769_v11 }
 0x197   : > { %v780_v14 = vmul.f32 %v776_v9, %v773_v13  ;;  %v781_v15 = vmul.f32 %v777_v10, %v773_v13 }
 0x199   : > { %v783_v18 = vmul.f32 %v780_v14, %v758_v60  ;;  %v784_v19 = vmul.f32 %v781_v15, %v758_v60  ;;  %v792_v20 = vmul.f32 %v780_v14, %v708_v51  ;;  %v793_v21 = vmul.f32 %v781_v15, %v747_v52 }
 0x19b   : > { %v790_v22 = vsub.f32 %v786_v16, %v783_v18  ;;  %v791_v23 = vsub.f32 %v787_v17, %v784_v19 }
 0x19d   : > { %v794_v24 = vadd.f32 %v792_v20, %v790_v22  ;;  %v795_v25 = vadd.f32 %v793_v21, %v791_v23 }
 0x19f   : > { %796 = vst [vmem:[%s338_s9] sm:$0xff] %v794_v24 }
 0x1a0   : > { %797 = vst [vmem:[%s338_s9 + $0x8] sm:$0xff] %v795_v25 }
 0x1a1   : > { %1452 = shalt.err (!%p1449_p13)
}
 0x1a2   : > { %1225 = dma.vmem_to_hbm [thread:$0]  (%p1629_p2), %s815_s10, 256, %s817_s21, %s799_s11  }
 0x1a3 PF: > { %s828_s14 = sand.u32 1, %s1499_s18   ;;  %p1242_p0 = pnand %p952_p6, %p1636_p5 }
 0x1a4   : > { %s829_s2 = scalar_lea.sflag [#allocation5], %s828_s14 }
 0x1a5   : > { %p1243_p4 = pneg %p1242_p0 }
 0x1a7   : > { %1494 = dma.done.wait (%p1243_p4), %s829_s2, 256  }
 0x1a8   : > { %1496 = vsyncadd (%p1243_p4), %s829_s2, 4294967040  ;;  %s25_s23 = sadd.s32 1, %s1519_s23   ;;  %s1764_s4 = sld [smem:[#allocation17_spill]] }
 0x1a9   : > { %p22_p7 = scmp.ge.s32.totalorder %s25_s23, 4   ;;  %s1765_s20 = sld [smem:[#allocation20_spill]] }
 0x1aa   : > { %s1766_s21 = sld [smem:[#allocation18_spill]]  ;;  %s1768_s18 = smov %s1503_s19 }
 0x1ab   : > { %s1767_s22 = sld [smem:[#allocation19_spill]]  ;;  %24 = sbr.rel (!%p22_p7) target bundleno = 12 (0xc), region = 106 }
 0x1ae   : > { %s1769_s19 = smov %s1764_s4 }
 0x1b0   :  { %835 = vsyncpa [#allocation4], 1 }
 0x1b1   :  { %837 = vsyncpa [#allocation4 + $0x1], 1 }
 0x1b2   :  { %838 = vsyncpa [#allocation7], 1 }
 0x1b3   :  { %840 = vsyncpa [#allocation7 + $0x1], 1 }
 0x1b4   :  { %841 = vsyncpa [#allocation10], 1 }
 0x1b5   :  { %842 = vsyncpa [#allocation5], 1 }
 0x1b6   :  { %844 = vsyncpa [#allocation5 + $0x1], 1 }

</bundles_post_ra>
